<compile_context>
chip_gen: v7x
topology: tpu7x:2x2x1
jax: 0.10.0
libtpu: 0.0.40
codegen_flags: <defaults>
</compile_context>

<pallas_src>
import jax
import jax.numpy as jnp
from jax.experimental import pallas as pl
from jax.experimental.pallas import tpu as pltpu


def _round_up(x, m):
    return (x + m - 1) // m * m


def _cdiv(a, b):
    return (a + b - 1) // b


def _vmem_capacity_bytes():
    """Per-generation VMEM capacity (v5e/v6e: 128 MiB, v7x: 64 MiB per TC)."""
    try:
        return int(pltpu.get_tpu_info().vmem_capacity_bytes)
    except Exception:
        return 64 << 20   # conservative fallback (v7x per-TensorCore figure)


# ----------------------------------------------------------------------------
# Kernel
# ----------------------------------------------------------------------------
def decoder_kernel(x_ref, w1_ref, b1_ref, w2_ref, b2_ref, w3_ref, b3_ref, o_ref):
    """Fused 3-layer MLP.  x / weights are bf16 (MXU inputs), accumulation and
    the elementwise epilogue (bias, ReLU, sigmoid) are f32."""
    x = x_ref[...]                                                    # bf16

    h1 = jnp.dot(x, w1_ref[...], preferred_element_type=jnp.float32)
    h1 = jnp.maximum(h1 + b1_ref[...], 0.0)                          # f32

    h2 = jnp.dot(h1.astype(jnp.bfloat16), w2_ref[...],
                 preferred_element_type=jnp.float32)
    h2 = jnp.maximum(h2 + b2_ref[...], 0.0)                          # f32

    z = jnp.dot(h2.astype(jnp.bfloat16), w3_ref[...],
                preferred_element_type=jnp.float32) + b3_ref[...]    # f32

    # sigmoid(z) = 0.5 * tanh(0.5 * z) + 0.5  -> ONE EUP push per element
    # (vs. exp + reciprocal = two); adds/muls ride in otherwise-idle VALU slots.
    o_ref[...] = (0.5 * jnp.tanh(0.5 * z) + 0.5).astype(o_ref.dtype)


# ----------------------------------------------------------------------------
# One-time parameter preparation (outside the hot path)
# ----------------------------------------------------------------------------
def prepare_decoder_params(params):
    """Convert f32 (fan_in, fan_out) params into kernel-ready form ONCE:
    bf16 weights, f32 biases, every dimension zero-padded to a multiple of 128
    so all MXU operands are lane-dense and the output stores are unmasked.
    Zero-padded hidden columns produce relu(0+0)=0 and hit zero-padded rows of
    the next weight, so results are unchanged."""
    w1, b1, w2, b2, w3, b3 = params
    in_dim, h1_dim = w1.shape
    h2_dim = w2.shape[1]
    out_dim = w3.shape[1]

    in_p = _round_up(in_dim, 128)
    h1_p = _round_up(h1_dim, 128)
    h2_p = _round_up(h2_dim, 128)
    out_p = _round_up(out_dim, 128)

    def pad2(a, r, c):
        return jnp.pad(a, ((0, r - a.shape[0]), (0, c - a.shape[1])))

    prepared = (
        pad2(w1, in_p, h1_p).astype(jnp.bfloat16),
        pad2(b1, 1, h1_p).astype(jnp.float32),
        pad2(w2, h1_p, h2_p).astype(jnp.bfloat16),
        pad2(b2, 1, h2_p).astype(jnp.float32),
        pad2(w3, h2_p, out_p).astype(jnp.bfloat16),
        pad2(b3, 1, out_p).astype(jnp.float32),
    )
    meta = dict(in_dim=in_dim, in_pad=in_p, h1_pad=h1_p, h2_pad=h2_p,
                out_dim=out_dim, out_pad=out_p)
    return prepared, meta


# ----------------------------------------------------------------------------
# Wrapper
# ----------------------------------------------------------------------------
def decoder_forward(x, prepared_params, meta, *, batch_tile=None, out_dtype=None):
    """Run the fused decoder MLP as a single Pallas call, tiled over batch.

    prepared_params / meta come from prepare_decoder_params (kernel-ready,
    bf16, 128-padded).  out_dtype=jnp.bfloat16 halves output VMEM/writeback.
    """
    w1p, b1p, w2p, b2p, w3p, b3p = prepared_params
    B = x.shape[0]
    in_dim, in_pad = meta["in_dim"], meta["in_pad"]
    h1_pad, h2_pad = meta["h1_pad"], meta["h2_pad"]
    out_dim, out_pad = meta["out_dim"], meta["out_pad"]

    if out_dtype is None:
        out_dtype = x.dtype
    out_itemsize = jnp.dtype(out_dtype).itemsize

    weight_bytes = sum(int(p.size) * p.dtype.itemsize for p in prepared_params)

    # --- generation-aware VMEM budget -----------------------------------------
    cap = _vmem_capacity_bytes()
    # ~48 MiB on v7x (64 MiB VMEM), ~109 MiB on v5e/v6e (128 MiB VMEM).
    budget = min(cap - (16 << 20), int(cap * 0.85))

    if weight_bytes > 0.6 * budget:
        # TODO(synk): N-tiled (output-column-tiled) Pallas fallback for very wide
        # layers whose resident weights exceed ~60% of VMEM; defer to XLA here.
        xb = jnp.pad(x, ((0, 0), (0, in_pad - in_dim))).astype(jnp.bfloat16)
        h1 = jnp.maximum(
            jnp.dot(xb, w1p, preferred_element_type=jnp.float32) + b1p, 0.0)
        h2 = jnp.maximum(
            jnp.dot(h1.astype(jnp.bfloat16), w2p,
                    preferred_element_type=jnp.float32) + b2p, 0.0)
        z = jnp.dot(h2.astype(jnp.bfloat16), w3p,
                    preferred_element_type=jnp.float32) + b3p
        return (0.5 * jnp.tanh(0.5 * z) + 0.5)[:, :out_dim].astype(out_dtype)

    # --- per-tile VMEM estimate ------------------------------------------------
    def vmem_bytes(bt):
        return (2 * bt * in_pad * 2                 # x tiles (bf16, double-buffered)
                + 2 * bt * out_pad * out_itemsize   # out tiles (double-buffered)
                + weight_bytes                      # resident, single-buffered
                + bt * (h1_pad + h2_pad) * 6)       # f32 activations + bf16 recasts

    # --- batch tile selection (multiple of 16 rows for bf16 sublane packing) --
    auto_tile = batch_tile is None
    if auto_tile:
        max_tile = 512                              # big M fills the 256x256 MXU
        batch_tile = _cdiv(B, _cdiv(B, max_tile))   # minimize padded-batch work
    batch_tile = max(16, _round_up(batch_tile, 16))

    # shrink to fit the VMEM budget
    while batch_tile > 16 and vmem_bytes(batch_tile) > budget:
        batch_tile = max(16, _round_up(batch_tile // 2, 16))

    B_pad = _round_up(B, batch_tile)
    # v7x has 2 TensorCores: make sure the "parallel" axis has >= 2 steps.
    if auto_tile and B_pad // batch_tile == 1 and batch_tile >= 32:
        batch_tile = max(16, _round_up(_cdiv(batch_tile, 2), 16))
        B_pad = _round_up(B, batch_tile)

    grid = (B_pad // batch_tile,)

    # --- per-call x prep (hot data only; weights were prepared once) ----------
    x_p = x
    if B_pad != B or in_pad != in_dim:
        x_p = jnp.pad(x_p, ((0, B_pad - B), (0, in_pad - in_dim)))
    x_p = x_p.astype(jnp.bfloat16)

    # Resident (grid-invariant) operands: single-buffered to halve VMEM use.
    def resident(arr):
        return pl.BlockSpec(arr.shape, lambda i: (0, 0),
                            pipeline_mode=pl.Buffered(1))

    # --- cost estimate for XLA scheduling --------------------------------------
    flops = 2 * B_pad * (in_pad * h1_pad + h1_pad * h2_pad + h2_pad * out_pad)
    bytes_accessed = (x_p.size * 2 + weight_bytes + B_pad * out_pad * out_itemsize)
    cost = pl.CostEstimate(flops=int(flops),
                           transcendentals=int(B_pad * out_pad),
                           bytes_accessed=int(bytes_accessed))

    vmem_limit = int(min(max(int(1.5 * vmem_bytes(batch_tile)), 4 << 20), budget))

    out = pl.pallas_call(
        decoder_kernel,
        out_shape=jax.ShapeDtypeStruct((B_pad, out_pad), out_dtype),
        grid=grid,
        in_specs=[
            pl.BlockSpec((batch_tile, in_pad), lambda i: (i, 0)),   # x (tiled)
            resident(w1p), resident(b1p),
            resident(w2p), resident(b2p),
            resident(w3p), resident(b3p),
        ],
        out_specs=pl.BlockSpec((batch_tile, out_pad), lambda i: (i, 0)),
        compiler_params=pltpu.CompilerParams(
            dimension_semantics=("parallel",),
            vmem_limit_bytes=vmem_limit),
        cost_estimate=cost,
    )(x_p, w1p, b1p, w2p, b2p, w3p, b3p)

    # Slice off batch / lane padding.
    return out[:B, :out_dim]


# ----------------------------------------------------------------------------
# Params & reference
# ----------------------------------------------------------------------------
def init_decoder_params(key, input_size, output_size):
    """Mirror PyTorch nn.Linear default init: U(-1/sqrt(fan_in), 1/sqrt(fan_in)).
    Weights stored transposed as (fan_in, fan_out) so the kernel does x @ W + b."""
    dims = [(input_size, input_size * 2),
            (input_size * 2, input_size * 4),
            (input_size * 4, output_size)]
    params = []
    for fan_in, fan_out in dims:
        key, kw, kb = jax.random.split(key, 3)
        bound = 1.0 / jnp.sqrt(float(fan_in))
        w = jax.random.uniform(kw, (fan_in, fan_out), jnp.float32, -bound, bound)
        b = jax.random.uniform(kb, (1, fan_out), jnp.float32, -bound, bound)
        params += [w, b]
    return tuple(params)


def decoder_reference(x, params):
    """Plain-JAX f32 reference for correctness check."""
    w1, b1, w2, b2, w3, b3 = params
    h1 = jnp.maximum(x @ w1 + b1, 0.0)
    h2 = jnp.maximum(h1 @ w2 + b2, 0.0)
    return jax.nn.sigmoid(h2 @ w3 + b3)


# ----------------------------------------------------------------------------
# Demo / correctness check
# ----------------------------------------------------------------------------
if __name__ == "__main__":
    key = jax.random.PRNGKey(0)
    batch, input_size, output_size = 20, 32, 16   # ragged batch, small dims

    kx, kp = jax.random.split(key)
    x = jax.random.normal(kx, (batch, input_size), jnp.float32)
    params = init_decoder_params(kp, input_size, output_size)

    # one-time, out-of-hot-path weight preparation (bf16 cast + 128 padding)
    prepared, meta = prepare_decoder_params(params)

    ref = decoder_reference(x, params)

    # explicit small tile: exercises a multi-step grid + batch padding
    out = jax.block_until_ready(decoder_forward(x, prepared, meta, batch_tile=16))
    assert out.shape == (batch, output_size), out.shape
    # bf16 matmul operands -> looser tolerance than pure f32
    assert jnp.allclose(out, ref, atol=2e-2, rtol=2e-2), "mismatch vs reference"

    # default auto-tile path (tight tile choice + dual-TC grid split)
    out2 = jax.block_until_ready(decoder_forward(x, prepared, meta))
    assert jnp.allclose(out2, ref, atol=2e-2, rtol=2e-2), "mismatch (default tile)"

    # bf16 output path (halves output VMEM / HBM writeback)
    out3 = jax.block_until_ready(
        decoder_forward(x, prepared, meta, out_dtype=jnp.bfloat16))
    assert out3.dtype == jnp.bfloat16
    assert jnp.allclose(out3.astype(jnp.float32), ref, atol=3e-2, rtol=3e-2), \
        "mismatch (bf16 output)"

    print("KERNEL_OK")
</pallas_src>

<mosaic_0001>
module attributes {stable_mosaic.version = 11 : i64} {
  func.func @decoder_kernel(%arg0: i32, %arg1: memref<16x128xbf16, #tpu.memory_space<vmem>>, %arg2: memref<128x128xbf16, #tpu.memory_space<vmem>>, %arg3: memref<1x128xf32, #tpu.memory_space<vmem>>, %arg4: memref<128x128xbf16, #tpu.memory_space<vmem>>, %arg5: memref<1x128xf32, #tpu.memory_space<vmem>>, %arg6: memref<128x128xbf16, #tpu.memory_space<vmem>>, %arg7: memref<1x128xf32, #tpu.memory_space<vmem>>, %arg8: memref<16x128xf32, #tpu.memory_space<vmem>>) attributes {dimension_semantics = [#tpu.dimension_semantics<parallel>], iteration_bounds = array<i64: 2>, scalar_prefetch = 0 : i64, scratch_operands = 0 : i64, tpu.core_type = #tpu.core_type<tc>, window_params = [{transform_indices = @transform_0, window_bounds = array<i64: 16, 128>}, {pipeline_mode = #tpu.pipeline_mode<synchronous>, transform_indices = @transform_1, window_bounds = array<i64: 128, 128>}, {pipeline_mode = #tpu.pipeline_mode<synchronous>, transform_indices = @transform_2, window_bounds = array<i64: 1, 128>}, {pipeline_mode = #tpu.pipeline_mode<synchronous>, transform_indices = @transform_3, window_bounds = array<i64: 128, 128>}, {pipeline_mode = #tpu.pipeline_mode<synchronous>, transform_indices = @transform_4, window_bounds = array<i64: 1, 128>}, {pipeline_mode = #tpu.pipeline_mode<synchronous>, transform_indices = @transform_5, window_bounds = array<i64: 128, 128>}, {pipeline_mode = #tpu.pipeline_mode<synchronous>, transform_indices = @transform_6, window_bounds = array<i64: 1, 128>}, {transform_indices = @transform_7, window_bounds = array<i64: 16, 128>}]} {
    %c0 = arith.constant 0 : index
    %c0_0 = arith.constant 0 : index
    %0 = vector.load %arg1[%c0, %c0_0] : memref<16x128xbf16, #tpu.memory_space<vmem>>, vector<16x128xbf16>
    %c0_1 = arith.constant 0 : index
    %c0_2 = arith.constant 0 : index
    %1 = vector.load %arg2[%c0_1, %c0_2] : memref<128x128xbf16, #tpu.memory_space<vmem>>, vector<128x128xbf16>
    %cst = arith.constant dense<0.000000e+00> : vector<16x128xf32>
    %2 = tpu.matmul %0, %1, %cst {dimension_numbers = #tpu.dot_dimension_numbers<[1], [0], [0], [1], [0, 0, 1, 1], [], []>} : vector<16x128xbf16>, vector<128x128xbf16>, vector<16x128xf32> -> vector<16x128xf32>
    %c0_3 = arith.constant 0 : index
    %c0_4 = arith.constant 0 : index
    %3 = vector.load %arg3[%c0_3, %c0_4] : memref<1x128xf32, #tpu.memory_space<vmem>>, vector<1x128xf32>
    %4 = vector.broadcast %3 : vector<1x128xf32> to vector<16x128xf32>
    %5 = arith.addf %2, %4 : vector<16x128xf32>
    %cst_5 = arith.constant 0.000000e+00 : f32
    %6 = vector.broadcast %cst_5 : f32 to vector<16x128xf32>
    %7 = arith.maximumf %5, %6 : vector<16x128xf32>
    %8 = arith.truncf %7 : vector<16x128xf32> to vector<16x128xbf16>
    %c0_6 = arith.constant 0 : index
    %c0_7 = arith.constant 0 : index
    %9 = vector.load %arg4[%c0_6, %c0_7] : memref<128x128xbf16, #tpu.memory_space<vmem>>, vector<128x128xbf16>
    %cst_8 = arith.constant dense<0.000000e+00> : vector<16x128xf32>
    %10 = tpu.matmul %8, %9, %cst_8 {dimension_numbers = #tpu.dot_dimension_numbers<[1], [0], [0], [1], [0, 0, 1, 1], [], []>} : vector<16x128xbf16>, vector<128x128xbf16>, vector<16x128xf32> -> vector<16x128xf32>
    %c0_9 = arith.constant 0 : index
    %c0_10 = arith.constant 0 : index
    %11 = vector.load %arg5[%c0_9, %c0_10] : memref<1x128xf32, #tpu.memory_space<vmem>>, vector<1x128xf32>
    %12 = vector.broadcast %11 : vector<1x128xf32> to vector<16x128xf32>
    %13 = arith.addf %10, %12 : vector<16x128xf32>
    %cst_11 = arith.constant 0.000000e+00 : f32
    %14 = vector.broadcast %cst_11 : f32 to vector<16x128xf32>
    %15 = arith.maximumf %13, %14 : vector<16x128xf32>
    %16 = arith.truncf %15 : vector<16x128xf32> to vector<16x128xbf16>
    %c0_12 = arith.constant 0 : index
    %c0_13 = arith.constant 0 : index
    %17 = vector.load %arg6[%c0_12, %c0_13] : memref<128x128xbf16, #tpu.memory_space<vmem>>, vector<128x128xbf16>
    %cst_14 = arith.constant dense<0.000000e+00> : vector<16x128xf32>
    %18 = tpu.matmul %16, %17, %cst_14 {dimension_numbers = #tpu.dot_dimension_numbers<[1], [0], [0], [1], [0, 0, 1, 1], [], []>} : vector<16x128xbf16>, vector<128x128xbf16>, vector<16x128xf32> -> vector<16x128xf32>
    %c0_15 = arith.constant 0 : index
    %c0_16 = arith.constant 0 : index
    %19 = vector.load %arg7[%c0_15, %c0_16] : memref<1x128xf32, #tpu.memory_space<vmem>>, vector<1x128xf32>
    %20 = vector.broadcast %19 : vector<1x128xf32> to vector<16x128xf32>
    %21 = arith.addf %18, %20 : vector<16x128xf32>
    %cst_17 = arith.constant 5.000000e-01 : f32
    %22 = vector.broadcast %cst_17 : f32 to vector<16x128xf32>
    %23 = arith.mulf %22, %21 : vector<16x128xf32>
    %24 = math.tanh %23 : vector<16x128xf32>
    %cst_18 = arith.constant 5.000000e-01 : f32
    %25 = vector.broadcast %cst_18 : f32 to vector<16x128xf32>
    %26 = arith.mulf %25, %24 : vector<16x128xf32>
    %cst_19 = arith.constant 5.000000e-01 : f32
    %27 = vector.broadcast %cst_19 : f32 to vector<16x128xf32>
    %28 = arith.addf %26, %27 : vector<16x128xf32>
    %c0_20 = arith.constant 0 : index
    %c0_21 = arith.constant 0 : index
    %29 = vector.load %arg8[%c0_20, %c0_21] : memref<16x128xf32, #tpu.memory_space<vmem>>, vector<16x128xf32>
    tpu.vector_store %arg8[%c0_20, %c0_21], %28 {strides = array<i32>} : memref<16x128xf32, #tpu.memory_space<vmem>>, vector<16x128xf32>,
    return
  }
  func.func @transform_0(%arg0: i32) -> (i32, i32) {
    %c0_i32 = arith.constant 0 : i32
    %c0_i32_0 = arith.constant 0 : i32
    return %arg0, %c0_i32 : i32, i32
  }
  func.func @transform_1(%arg0: i32) -> (i32, i32) {
    %c0_i32 = arith.constant 0 : i32
    %c0_i32_0 = arith.constant 0 : i32
    %c0_i32_1 = arith.constant 0 : i32
    return %c0_i32, %c0_i32_0 : i32, i32
  }
  func.func @transform_2(%arg0: i32) -> (i32, i32) {
    %c0_i32 = arith.constant 0 : i32
    %c0_i32_0 = arith.constant 0 : i32
    %c0_i32_1 = arith.constant 0 : i32
    return %c0_i32, %c0_i32_0 : i32, i32
  }
  func.func @transform_3(%arg0: i32) -> (i32, i32) {
    %c0_i32 = arith.constant 0 : i32
    %c0_i32_0 = arith.constant 0 : i32
    %c0_i32_1 = arith.constant 0 : i32
    return %c0_i32, %c0_i32_0 : i32, i32
  }
  func.func @transform_4(%arg0: i32) -> (i32, i32) {
    %c0_i32 = arith.constant 0 : i32
    %c0_i32_0 = arith.constant 0 : i32
    %c0_i32_1 = arith.constant 0 : i32
    return %c0_i32, %c0_i32_0 : i32, i32
  }
  func.func @transform_5(%arg0: i32) -> (i32, i32) {
    %c0_i32 = arith.constant 0 : i32
    %c0_i32_0 = arith.constant 0 : i32
    %c0_i32_1 = arith.constant 0 : i32
    return %c0_i32, %c0_i32_0 : i32, i32
  }
  func.func @transform_6(%arg0: i32) -> (i32, i32) {
    %c0_i32 = arith.constant 0 : i32
    %c0_i32_0 = arith.constant 0 : i32
    %c0_i32_1 = arith.constant 0 : i32
    return %c0_i32, %c0_i32_0 : i32, i32
  }
  func.func @transform_7(%arg0: i32) -> (i32, i32) {
    %c0_i32 = arith.constant 0 : i32
    %c0_i32_0 = arith.constant 0 : i32
    return %arg0, %c0_i32 : i32, i32
  }
}

</mosaic_0001>

<bundles_post_ra>
// kernel: tpu_custom_call.1
= control target key start
LH: loop header
LB: loop body
LE: loop exit
PB: predicated region body
PF: predicated region fallthrough
CT: control target
= control target key end

     0   :  { %12 = vsyncpa [#allocation3], 0  ;;  %s1624_s0 = inlined_call_operand.hbm [shape: bf16[32,128], index: 0, kind: input, shape index: {}]   ;;  %s1625_s1 = inlined_call_operand.hbm [shape: bf16[128,128], index: 1, kind: input, shape index: {}]   ;;  %s1626_s2 = inlined_call_operand.vmem [shape: f32[1,128], index: 2, kind: input, shape index: {}]   ;;  %s1627_s3 = inlined_call_operand.hbm [shape: bf16[128,128], index: 3, kind: input, shape index: {}]   ;;  %s1628_s4 = inlined_call_operand.vmem [shape: f32[1,128], index: 4, kind: input, shape index: {}]   ;;  %s1629_s5 = inlined_call_operand.hbm [shape: bf16[128,128], index: 5, kind: input, shape index: {}]   ;;  %s1630_s6 = inlined_call_operand.vmem [shape: f32[1,128], index: 6, kind: input, shape index: {}]   ;;  %s1631_s7 = inlined_call_operand.hbm [shape: f32[32,128], index: 7, kind: output, shape index: {}]  }
   0x1   :  { %14 = vsyncpa [#allocation3 + $0x1], 0 }
   0x2   :  { %15 = vsyncpa [#allocation6], 0 }
   0x3   :  { %16 = vsyncpa [#allocation9], 0 }
   0x4   :  { %17 = vsyncpa [#allocation4], 0 }
   0x5   :  { %19 = vsyncpa [#allocation4 + $0x1], 0  ;;  %s1310_s24 = smov 0   ;;  %s1312_s25 = smov 0  }
   0x6   :  { %s1314_s26 = smov 0   ;;  %s1316_s27 = smov 0  }
   0x7 LB: > { %s1331_s28 = sadd.s32 4294967295, %s1257_s27   ;;  %s820_s29 = sadd.s32 4294967294, %s1257_s27   ;;  %s1257_s27 = sphi %s1316_s27, %s1657_s27   ;;  %s1253_s26 = sphi %s1314_s26, %s1656_s26   ;;  %s1249_s25 = sphi %s1312_s25, %s1655_s25   ;;  %s1245_s24 = sphi %s1310_s24, %s1654_s24  }
   0x8   : > { %p45_p0 = scmp.ne.s32.totalorder %s1249_s25, %s1245_s24  ;;  %p1632_p1 = scmp.eq.s32.totalorder %s1331_s28, 0 }
   0x9   : > { %p201_p3 = scmp.eq.s32.totalorder %s820_s29, 1  ;;  %p821_p5 = scmp.ge.s32.totalorder %s1257_s27, 1 }
   0xa   : > { %p1340_p4 = por %p1632_p1, %p45_p0  ;;  %p208_p7 = scmp.lt.s32.totalorder %s1257_s27, 3 }
   0xb   : > { %p1345_p6 = por %p201_p3, %p45_p0  ;;  %s1259_s10 = smov [#allocation5]  }
   0xc   : > { %s1636_s30 = scalar_select %p1340_p4, 1, 0 }
   0xd   : > { %s1637_s8 = scalar_select %p1345_p6, 1, 0 }
   0xe   : > { %p1350_p8 = pnand %p821_p5, %p208_p7  ;;  %s220_s11 = sshll.u32 %s1259_s10, 4  ;;  %s1354_s11 = int_to_ptr.vmem [resolvable:$true] %s220_s11 }
   0xf   : > { %1638 = sst [smem:[#allocation15_spill]] %s1637_s8  ;;  %s1260_s13 = smov [#allocation7]  }
  0x10   : > { %s1639_s9 = scalar_select %p1350_p8, 1, 0 }
  0x11   : > { %p973_p9 = pneg %p1350_p8  ;;  %s236_s14 = sshll.u32 %s1260_s13, 4  ;;  %s1365_s14 = int_to_ptr.vmem [resolvable:$true] %s236_s14 }
  0x12   : > { %s1261_s15 = smov [#allocation8]   ;;  %s1069_s19 = scalar_lea.hbm %s1625_s1, 1024 }
  0x13   : > { %p1361_p11 = pnand %p973_p9, %p1632_p1  ;;  %s1367_s16 = sshll.u32 %s1261_s15, 4  ;;  %s253_s16 = int_to_ptr.vmem [resolvable:$true] %s1367_s16 }
  0x14   : > { %p1070_p12 = scmp.ne.s32.totalorder %s1625_s1, %s1069_s19  ;;  %p1076_p5 = scmp.lt.u32.totalorder %s1069_s19, %s1625_s1 }
  0x15   : > { %p1377_p13 = pneg %p1361_p11 }
  0x17   : > { %p1072_p0 = pnand %p1377_p13, %p1070_p12 }
  0x19   : > { %p1073_p3 = pneg %p1072_p0 }
  0x1b   : > { %p1078_p7 = pnand %p1076_p5, %p1073_p3 }
  0x1d   : > { %1081 = shalt.err (!%p1078_p7)
}
  0x1e   : > { %s1082_s10 = scalar_lea.vmem %s1354_s11, 1024  ;;  %p1090_p2 = scmp.lt.s32.totalorder %s1354_s11, %s1354_s11 }
  0x1f   : > { %p1083_p9 = scmp.ne.s32.totalorder %s1354_s11, %s1082_s10  ;;  %p1091_p6 = scmp.lt.s32.totalorder %s1082_s10, %s1082_s10 }
  0x21   : > { %p1085_p10 = pnand %p1083_p9, %p1377_p13  ;;  %p1092_p12 = por %p1091_p6, %p1090_p2 }
  0x23   : > { %p1086_p1 = pneg %p1085_p10 }
  0x25   : > { %p1093_p0 = pnand %p1092_p12, %p1086_p1 }
  0x27   : > { %1096 = shalt.err (!%p1093_p0)
}
  0x28   : > { %s1262_s13 = smov 64   ;;  %s1263_s15 = smov 4  }
  0x29   : > { %976 = dma.hbm_to_vmem [thread:$0]  (!%p1361_p11), %s1625_s1, 1024, %s1354_s11, [#allocation6], %s1262_s13, %s1262_s13, %s1263_s15  }
  0x2a   : > { %s1097_s21 = scalar_lea.hbm %s1627_s3, 1024 }
  0x2b   : > { %p1098_p1 = scmp.ne.s32.totalorder %s1627_s3, %s1097_s21  ;;  %p1104_p10 = scmp.lt.u32.totalorder %s1097_s21, %s1627_s3 }
  0x2d   : > { %p1100_p2 = pnand %p1098_p1, %p1377_p13 }
  0x2f   : > { %p1101_p6 = pneg %p1100_p2 }
  0x31   : > { %p1106_p3 = pnand %p1104_p10, %p1101_p6 }
  0x33   : > { %1109 = shalt.err (!%p1106_p3)
}
  0x34   : > { %s1110_s11 = scalar_lea.vmem %s1365_s14, 1024  ;;  %p1118_p12 = scmp.lt.s32.totalorder %s1365_s14, %s1365_s14 }
  0x35   : > { %p1111_p5 = scmp.ne.s32.totalorder %s1365_s14, %s1110_s11  ;;  %p1119_p0 = scmp.lt.s32.totalorder %s1110_s11, %s1110_s11 }
  0x37   : > { %p1113_p7 = pnand %p1111_p5, %p1377_p13  ;;  %p1120_p1 = por %p1119_p0, %p1118_p12 }
  0x39   : > { %p1114_p9 = pneg %p1113_p7 }
  0x3b   : > { %p1121_p2 = pnand %p1120_p1, %p1114_p9 }
  0x3d   : > { %1124 = shalt.err (!%p1121_p2)
}
  0x3e   : > { %979 = dma.hbm_to_vmem [thread:$0]  (!%p1361_p11), %s1627_s3, 1024, %s1365_s14, [#allocation6], %s1262_s13, %s1262_s13, %s1263_s15  }
  0x3f   : > { %s1125_s20 = scalar_lea.hbm %s1629_s5, 1024 }
  0x40   : > { %p1126_p6 = scmp.ne.s32.totalorder %s1629_s5, %s1125_s20  ;;  %p1132_p5 = scmp.lt.u32.totalorder %s1125_s20, %s1629_s5 }
  0x42   : > { %p1128_p10 = pnand %p1126_p6, %p1377_p13 }
  0x44   : > { %p1129_p3 = pneg %p1128_p10 }
  0x46   : > { %p1134_p7 = pnand %p1132_p5, %p1129_p3 }
  0x48   : > { %1137 = shalt.err (!%p1134_p7)
}
  0x49   : > { %s1138_s11 = scalar_lea.vmem %s253_s16, 1024  ;;  %p1146_p1 = scmp.lt.s32.totalorder %s253_s16, %s253_s16 }
  0x4a   : > { %p1139_p9 = scmp.ne.s32.totalorder %s253_s16, %s1138_s11  ;;  %p1147_p2 = scmp.lt.s32.totalorder %s1138_s11, %s1138_s11 }
  0x4c   : > { %p1141_p12 = pnand %p1139_p9, %p1377_p13  ;;  %p1148_p4 = por %p1147_p2, %p1146_p1 }
  0x4e   : > { %p1142_p0 = pneg %p1141_p12 }
  0x50   : > { %p1149_p8 = pnand %p1148_p4, %p1142_p0 }
  0x52   : > { %1152 = shalt.err (!%p1149_p8)
}
  0x53   : > { %982 = dma.hbm_to_vmem [thread:$0]  (!%p1361_p11), %s1629_s5, 1024, %s253_s16, [#allocation9], %s1262_s13, %s1262_s13, %s1263_s15  }
  0x54   : > { %s1450_s22 = sadd.s32 1, %s1257_s27   ;;  %s32_s17 = sadd.s32 1, %s1253_s26 }
  0x55   : > { %s29_s12 = ssub.s32 %s1257_s27, %s1450_s22  ;;  %p39_p8 = scmp.ne.s32.totalorder %s1253_s26, %s1249_s25 }
  0x56   : > { %p30_p4 = scmp.eq.s32.totalorder %s29_s12, 0  ;;  %p40_p13 = scmp.eq.s32.totalorder %s1257_s27, 0 }
  0x57   : > { %p994_p6 = scmp.lt.s32.totalorder %s1257_s27, 2  ;;  %p1642_p3 = scmp.eq.s32.totalorder %s1331_s28, 1 }
  0x58   : > { %s1460_s18 = scalar_select %p30_p4, %s1253_s26, %s32_s17  }
  0x59   : > { %p41_p10 = por %p40_p13, %p39_p8  ;;  %p1464_p5 = por %p1642_p3, %p39_p8 }
  0x5a   : > { %s269_s20 = sand.u32 1, %s1253_s26   ;;  %s868_s21 = sshll.u32 %s1257_s27, 7 }
  0x5b   : > { %s826_s16 = sshll.u32 %s269_s20, 3  ;;  %s1473_s10 = scalar_lea.hbm %s1624_s0, %s868_s21 }
  0x5c   : > { %s273_s11 = scalar_lea.vmem [#allocation2], %s826_s16  ;;  %p1475_p11 = pnand %p994_p6, %p41_p10 }
  0x5d   : > { %s280_s14 = sshll.u32 %s273_s11, 4  ;;  %s1481_s12 = scalar_lea.sflag [#allocation3], %s269_s20  ;;  %s1479_s14 = int_to_ptr.vmem [resolvable:$true] %s280_s14 }
  0x5e   : > { %s1153_s17 = scalar_lea.hbm %s1473_s10, 128  ;;  %p1155_p9 = pneg %p1475_p11 }
  0x5f   : > { %p1154_p7 = scmp.ne.s32.totalorder %s1473_s10, %s1153_s17  ;;  %s1158_s23 = scalar_lea.hbm %s1624_s0, 256 }
  0x60   : > { %p1159_p1 = scmp.lt.u32.totalorder %s1473_s10, %s1624_s0  ;;  %p1160_p2 = scmp.lt.u32.totalorder %s1158_s23, %s1153_s17 }
  0x61   : > { %p1156_p12 = pnand %p1155_p9, %p1154_p7  ;;  %p1162_p8 = scmp.lt.u32.totalorder %s1153_s17, %s1473_s10 }
  0x62   : > { %p1161_p4 = por %p1160_p2, %p1159_p1 }
  0x63   : > { %p1157_p0 = pneg %p1156_p12 }
  0x64   : > { %p1163_p13 = por %p1162_p8, %p1161_p4 }
  0x66   : > { %p1164_p6 = pnand %p1163_p13, %p1157_p0 }
  0x68   : > { %1167 = shalt.err (!%p1164_p6)
}
  0x69   : > { %s1168_s20 = scalar_lea.vmem %s1479_s14, 128  ;;  %s1264_s21 = smov [#allocation2]  }
  0x6a   : > { %p1169_p10 = scmp.ne.s32.totalorder %s1479_s14, %s1168_s20  ;;  %s1173_s16 = sshll.u32 %s1264_s21, 4  ;;  %s1174_s16 = int_to_ptr.vmem [resolvable:$false] %s1173_s16 }
  0x6b   : > { %s1175_s29 = scalar_lea.vmem %s1174_s16, 256  ;;  %p1176_p12 = scmp.lt.s32.totalorder %s1479_s14, %s1174_s16 }
  0x6c   : > { %p1171_p3 = pnand %p1169_p10, %p1155_p9  ;;  %p1177_p1 = scmp.lt.s32.totalorder %s1175_s29, %s1168_s20 }
  0x6e   : > { %p1172_p7 = pneg %p1171_p3  ;;  %p1178_p2 = por %p1177_p1, %p1176_p12 }
  0x70   : > { %p1179_p4 = pnand %p1178_p2, %p1172_p7 }
  0x72   : > { %1182 = shalt.err (!%p1179_p4)
}
  0x73   : > { %986 = dma.hbm_to_vmem [thread:$0]  (!%p1475_p11), %s1473_s10, 128, %s1479_s14, %s1481_s12, %s1262_s13, %s1262_s13, %s1263_s15  }
  0x74   : > { %p1645_p9 = scmp.ne.s32.totalorder %s1639_s9, 0 }
  0x75   : > { %s1515_s17 = sand.u32 (!%p1645_p9), 1, %s1249_s25   ;;  %p1646_p0 = scmp.ne.s32.totalorder (!%p1645_p9), %s1636_s30, 0 }
  0x76   : > { %292 = sbr.rel (%p1645_p9) target bundleno = 855 (0x357), region = 48  ;;  %s830_s23 = sshll.u32 (!%p1645_p9), %s1515_s17, 3 }
  0x77   : > { %s295_s11 = scalar_lea.sflag (!%p1645_p9), [#allocation3], %s1515_s17  ;;  %s1519_s20 = scalar_lea.vmem (!%p1645_p9), [#allocation2], %s830_s23 }
  0x7d   : > { %1228 = dma.done.wait (%p1646_p0), %s295_s11, 128  }
  0x7e   : > { %1230 = vsyncadd (%p1646_p0), %s295_s11, 4294967168  ;;  %p1647_p11 = scmp.eq.s32.totalorder %s1331_s28, 0 }
  0x80   : > { %1232 = dma.done.wait (%p1647_p11), [#allocation6], 2048   ;;  %p1648_p8 = pmov %p1647_p11 }
  0x82   : > { %1234 = vsyncadd (%p1648_p8), [#allocation6], 4294965248  ;;  %p1649_p13 = pmov %p1648_p8 }
  0x83   : > { %p1650_p6 = pmov %p1648_p8 }
  0x84   : > { %1236 = dma.done.wait (%p1649_p13), [#allocation9], 1024  }
  0x85   : > { %1238 = vsyncadd (%p1650_p6), [#allocation9], 4294966272  ;;  %v1265_v0 = vmov 0.0   ;;  %vm1266_vm0 = vmmov 0   ;;  %v1040_v1 = vld [vmem:[#allocation5] sm:$0xff]   ;;  %v1041_v2 = vld [vmem:[#allocation5 + $0x8] sm:$0xff]  }
  0x86   : > { %897 = vmatprep.subr.bf16.mxu0 %v1265_v0  ;;  %913 = vmatprep.mubr.msk.bf16.mxu0 %vm1266_vm0, %v1265_v0  ;;  %v1042_v3 = vld [vmem:[#allocation5 + $0x10] sm:$0xff]   ;;  %v1049_v4 = vld [vmem:[#allocation7] sm:$0xff]   ;;  %v1043_v5 = vld [vmem:[#allocation5 + $0x18] sm:$0xff]   ;;  %s834_s8 = sshll.u32 %s1515_s17, 4  ;;  %s869_s16 = sshll.u32 %s1331_s28, 8 }
  0x87   : > { %917 = vmatprep.subr.bf16.mxu1 %v1265_v0  ;;  %933 = vmatprep.mubr.msk.bf16.mxu1 %vm1266_vm0, %v1265_v0  ;;  %v1050_v6 = vld [vmem:[#allocation7 + $0x8] sm:$0xff]   ;;  %v1044_v7 = vld [vmem:[#allocation5 + $0x20] sm:$0xff]   ;;  %v1051_v8 = vld [vmem:[#allocation7 + $0x10] sm:$0xff]   ;;  %s340_s12 = scalar_lea.vmem [#allocation10], %s834_s8  ;;  %s1580_s11 = scalar_lea.hbm %s1631_s7, %s869_s16 }
  0x88   : > { %898 = vmatpush3.bf16.msra.mxu0 %v1040_v1  ;;  %918 = vmatpush3.bf16.msra.mxu1 %v1049_v4  ;;  %v1045_v9 = vld [vmem:[#allocation5 + $0x28] sm:$0xff]   ;;  %v1052_v10 = vld [vmem:[#allocation7 + $0x18] sm:$0xff]   ;;  %v1046_v11 = vld [vmem:[#allocation5 + $0x30] sm:$0xff]   ;;  %s718_s21 = sshll.u32 %s340_s12, 4  ;;  %s1267_s28 = smov [#allocation10]   ;;  %s1575_s21 = int_to_ptr.vmem [resolvable:$true] %s718_s21 }
  0x89   : > { %899 = vmatprep.subr.bf16.mxu0 %v1265_v0  ;;  %919 = vmatprep.subr.bf16.mxu1 %v1265_v0  ;;  %v1053_v12 = vld [vmem:[#allocation7 + $0x20] sm:$0xff]   ;;  %v1047_v13 = vld [vmem:[#allocation5 + $0x38] sm:$0xff]   ;;  %v1054_v14 = vld [vmem:[#allocation7 + $0x28] sm:$0xff]   ;;  %s1183_s30 = scalar_lea.vmem %s1575_s21, 256  ;;  %s1187_s9 = sshll.u32 %s1267_s28, 4  ;;  %s1188_s9 = int_to_ptr.vmem [resolvable:$false] %s1187_s9 }
  0x8a   : > { %v1048_v15 = vld [vmem:[%s1519_s20] sm:$0xff]   ;;  %v1057_v18 = vld [vmem:[#allocation8] sm:$0xff]   ;;  %v1058_v19 = vld [vmem:[#allocation8 + $0x8] sm:$0xff]   ;;  %s705_s20 = scalar_lea.sflag [#allocation4], %s1515_s17  ;;  %p1184_p10 = scmp.ne.s32.totalorder %s1575_s21, %s1183_s30 }
  0x8b   : > { %v1055_v16 = vld [vmem:[#allocation7 + $0x30] sm:$0xff]   ;;  %v1056_v17 = vld [vmem:[#allocation7 + $0x38] sm:$0xff]   ;;  %v1061_v22 = vld [vmem:[#allocation8 + $0x20] sm:$0xff]   ;;  %s1189_s13 = scalar_lea.vmem %s1188_s9, 512  ;;  %p1190_p12 = scmp.lt.s32.totalorder %s1575_s21, %s1188_s9 }
  0x8c   : > { %900 = vmatpush3.bf16.msra.mxu0 %v1041_v2  ;;  %920 = vmatpush3.bf16.msra.mxu1 %v1050_v6  ;;  %v1059_v20 = vld [vmem:[#allocation8 + $0x10] sm:$0xff]   ;;  %v1060_v21 = vld [vmem:[#allocation8 + $0x18] sm:$0xff]   ;;  %v1062_v23 = vld [vmem:[#allocation8 + $0x28] sm:$0xff]   ;;  %p1185_p3 = pnand %p1184_p10, %p1464_p5  ;;  %p1191_p1 = scmp.lt.s32.totalorder %s1189_s13, %s1183_s30 }
  0x8d   : > { %901 = vmatprep.subr.bf16.mxu0 %v1265_v0  ;;  %921 = vmatprep.subr.bf16.mxu1 %v1265_v0  ;;  %v835_v24 = vld [vmem:[%s1626_s2] ss:$0 sm:$0xff]  ;;  %v1064_v35 = vld [vmem:[#allocation8 + $0x38] sm:$0xff]  }
  0x8e   : > { %v1063_v34 = vld [vmem:[#allocation8 + $0x30] sm:$0xff]   ;;  %p1186_p7 = pneg %p1185_p3  ;;  %p1192_p2 = por %p1191_p1, %p1190_p12 }
  0x8f   : > { %v845_v36 = vld [vmem:[%s1628_s4] ss:$0 sm:$0xff] }
  0x90   : > { %902 = vmatpush3.bf16.msra.mxu0 %v1042_v3  ;;  %922 = vmatpush3.bf16.msra.mxu1 %v1051_v8  ;;  %v854_v46 = vld [vmem:[%s1630_s6] ss:$0 sm:$0xff]  ;;  %p1193_p4 = pnand %p1192_p2, %p1186_p7 }
  0x91   : > { %903 = vmatprep.subr.bf16.mxu0 %v1265_v0  ;;  %923 = vmatprep.subr.bf16.mxu1 %v1265_v0 }
  0x94   : > { %904 = vmatpush3.bf16.msra.mxu0 %v1043_v5  ;;  %924 = vmatpush3.bf16.msra.mxu1 %v1052_v10 }
  0x95   : > { %905 = vmatprep.subr.bf16.mxu0 %v1265_v0  ;;  %925 = vmatprep.subr.bf16.mxu1 %v1265_v0 }
  0x98   : > { %906 = vmatpush3.bf16.msra.mxu0 %v1044_v7  ;;  %926 = vmatpush3.bf16.msra.mxu1 %v1053_v12 }
  0x99   : > { %907 = vmatprep.subr.bf16.mxu0 %v1265_v0  ;;  %927 = vmatprep.subr.bf16.mxu1 %v1265_v0 }
  0x9c   : > { %908 = vmatpush3.bf16.msra.mxu0 %v1045_v9  ;;  %928 = vmatpush3.bf16.msra.mxu1 %v1054_v14 }
  0x9d   : > { %909 = vmatprep.subr.bf16.mxu0 %v1265_v0  ;;  %929 = vmatprep.subr.bf16.mxu1 %v1265_v0 }
  0xa0   : > { %910 = vmatpush3.bf16.msra.mxu0 %v1046_v11  ;;  %930 = vmatpush3.bf16.msra.mxu1 %v1055_v16 }
  0xa1   : > { %911 = vmatprep.subr.bf16.mxu0 %v1265_v0  ;;  %931 = vmatprep.subr.bf16.mxu1 %v1265_v0 }
  0xa4   : > { %912 = vmatpush3.bf16.msra.mxu0 %v1047_v13  ;;  %932 = vmatpush3.bf16.msra.mxu1 %v1056_v17 }
  0xa5   : > { %937 = vmatprep.subr.bf16.mxu0 %v1265_v0 }
  0xa7   : > { %914 = vmatmul.mubr.bf16.vlgmr.msra.gmra.mrb[0].mxu0 %v1048_v15 }
  0xa8   : > { %953 = vmatprep.mubr.msk.bf16.mxu0 %vm1266_vm0, %v1265_v0  ;;  %938 = vmatpush3.bf16.msra.mxu0 %v1057_v18 }
  0xa9   : > { %939 = vmatprep.subr.bf16.mxu0 %v1265_v0 }
  0xac   : > { %940 = vmatpush3.bf16.msra.mxu0 %v1058_v19 }
  0xad   : > { %941 = vmatprep.subr.bf16.mxu0 %v1265_v0 }
  0xb0   : > { %942 = vmatpush3.bf16.msra.mxu0 %v1059_v20 }
  0xb1   : > { %943 = vmatprep.subr.bf16.mxu0 %v1265_v0 }
  0xb4   : > { %944 = vmatpush3.bf16.msra.mxu0 %v1060_v21 }
  0xb5   : > { %945 = vmatprep.subr.bf16.mxu0 %v1265_v0 }
  0xb8   : > { %946 = vmatpush3.bf16.msra.mxu0 %v1061_v22 }
  0xb9   : > { %947 = vmatprep.subr.bf16.mxu0 %v1265_v0 }
  0xbc   : > { %948 = vmatpush3.bf16.msra.mxu0 %v1062_v23 }
  0xbd   : > { %949 = vmatprep.subr.bf16.mxu0 %v1265_v0 }
  0xc0   : > { %950 = vmatpush3.bf16.msra.mxu0 %v1063_v34 }
  0xc1   : > { %951 = vmatprep.subr.bf16.mxu0 %v1265_v0 }
  0xc4   : > { %952 = vmatpush3.bf16.msra.mxu0 %v1064_v35 }
 0x17a   : > { %v457_v25 = vpop.f32.mrb[0].mxu0 }
 0x17b   : > { %v458_v26 = vadd.f32 %v835_v24, %v457_v25  ;;  %v915_v27 = vpop.f32.mrb[1].mxu0 }
 0x17c   : > { %v460_v28 = vpop.f32.mrb[2].mxu0 }
 0x17d   : > { %v461_v29 = vadd.f32 %v835_v24, %v460_v28  ;;  %v916_v30 = vpop.f32.mrb[3].mxu0  ;;  %v464_v31 = vmax.f32 %v458_v26, 0.0 }
 0x17f   : > { %v465_v32 = vmax.f32 %v461_v29, 0.0 }
 0x181   : > { %v466_v33 = vpack.c.bf16 %v465_v32, %v464_v31 }
 0x183   : > { %934 = vmatmul.mubr.bf16.vlgmr.msra.gmra.mrb[0].mxu1 %v466_v33 }
 0x256   : > { %v572_v37 = vpop.f32.mrb[0].mxu1 }
 0x257   : > { %v573_v38 = vadd.f32 %v845_v36, %v572_v37  ;;  %v935_v39 = vpop.f32.mrb[1].mxu1 }
 0x258   : > { %v575_v40 = vpop.f32.mrb[2].mxu1 }
 0x259   : > { %v576_v41 = vadd.f32 %v845_v36, %v575_v40  ;;  %v936_v42 = vpop.f32.mrb[3].mxu1  ;;  %v579_v43 = vmax.f32 %v573_v38, 0.0 }
 0x25b   : > { %v580_v44 = vmax.f32 %v576_v41, 0.0 }
 0x25d   : > { %v581_v45 = vpack.c.bf16 %v580_v44, %v579_v43 }
 0x25f   : > { %954 = vmatmul.mubr.bf16.vlgmr.msra.gmra.mrb[4].mxu0 %v581_v45 }
 0x332   : > { %v687_v47 = vpop.f32.mrb[4].mxu0 }
 0x333   : > { %v688_v48 = vadd.f32 %v854_v46, %v687_v47  ;;  %v955_v49 = vpop.f32.mrb[5].mxu0 }
 0x334   : > { %v690_v50 = vpop.f32.mrb[6].mxu0 }
 0x335   : > { %v694_v51 = vmul.f32 0.5, %v688_v48  ;;  %v691_v52 = vadd.f32 %v854_v46, %v690_v50  ;;  %v956_v53 = vpop.f32.mrb[7].mxu0 }
 0x337   : > { %1065 = vtanh.f32 %v694_v51  ;;  %v695_v54 = vmul.f32 0.5, %v691_v52 }
 0x339   : > { %1067 = vtanh.f32 %v695_v54 }
 0x341   : > { %v1066_v55 = vpop.eup %1065 }
 0x342   : > { %v698_v56 = vmul.f32 0.5, %v1066_v55 }
 0x343   : > { %v1068_v57 = vpop.eup %1067 }
 0x344   : > { %v700_v58 = vadd.f32 0.5, %v698_v56  ;;  %v699_v59 = vmul.f32 0.5, %v1068_v57 }
 0x346   : > { %702 = vst [vmem:[%s340_s12] sm:$0xff] %v700_v58  ;;  %v701_v60 = vadd.f32 0.5, %v699_v59 }
 0x348   : > { %703 = vst [vmem:[%s340_s12 + $0x8] sm:$0xff] %v701_v60 }
 0x349   : > { %1196 = shalt.err (!%p1193_p4)
}
 0x34a   : > { %s1197_s15 = scalar_lea.hbm %s1580_s11, 256  ;;  %s1201_s8 = scalar_lea.hbm %s1631_s7, 512 }
 0x34b   : > { %p1198_p9 = scmp.ne.s32.totalorder %s1580_s11, %s1197_s15  ;;  %p1202_p8 = scmp.lt.u32.totalorder %s1580_s11, %s1631_s7 }
 0x34c   : > { %p1203_p13 = scmp.lt.u32.totalorder %s1201_s8, %s1197_s15  ;;  %p1205_p10 = scmp.lt.u32.totalorder %s1197_s15, %s1580_s11 }
 0x34d   : > { %p1199_p0 = pnand %p1198_p9, %p1464_p5 }
 0x34e   : > { %p1204_p6 = por %p1203_p13, %p1202_p8 }
 0x34f   : > { %p1200_p11 = pneg %p1199_p0 }
 0x350   : > { %p1206_p3 = por %p1205_p10, %p1204_p6 }
 0x352   : > { %p1207_p7 = pnand %p1206_p3, %p1200_p11 }
 0x354   : > { %1210 = shalt.err (!%p1207_p7)
}
 0x355   : > { %s1268_s29 = smov 128   ;;  %s1269_s23 = smov 8  }
 0x356   : > { %971 = dma.vmem_to_hbm [thread:$0]  (%p1464_p5), %s1575_s21, 256, %s1580_s11, %s705_s20, %s1268_s29, %s1268_s29, %s1269_s23  }
 0x357 PF: > { %s1651_s30 = sld [smem:[#allocation15_spill]]  ;;  %s733_s28 = sand.u32 1, %s1245_s24  }
 0x358   : > { %p1653_p1 = scmp.ge.s32.totalorder %s1257_s27, 2  ;;  %s734_s9 = scalar_lea.sflag [#allocation4], %s733_s28 }
 0x35d   : > { %p1652_p12 = scmp.ne.s32.totalorder %s1651_s30, 0 }
 0x35f   : > { %p988_p2 = pnand %p1653_p1, %p1652_p12 }
 0x361   : > { %1240 = dma.done.wait (!%p988_p2), %s734_s9, 256  }
 0x362   : > { %1242 = vsyncadd (!%p988_p2), %s734_s9, 4294967040  ;;  %p22_p4 = scmp.ge.s32.totalorder %s1450_s22, 4   ;;  %s1654_s24 = smov %s1249_s25 }
 0x363   : > { %s1655_s25 = smov %s1253_s26  ;;  %s1656_s26 = smov %s1460_s18 }
 0x364   : > { %s1657_s27 = smov %s1450_s22  ;;  %24 = sbr.rel (!%p22_p4) target bundleno = 7 (0x7), region = 105 }
 0x36b   :  { %739 = vsyncpa [#allocation3], 1 }
 0x36c   :  { %741 = vsyncpa [#allocation3 + $0x1], 1 }
 0x36d   :  { %742 = vsyncpa [#allocation6], 1 }
 0x36e   :  { %743 = vsyncpa [#allocation9], 1 }
 0x36f   :  { %744 = vsyncpa [#allocation4], 1 }
 0x370   :  { %746 = vsyncpa [#allocation4 + $0x1], 1 }

</bundles_post_ra>
